<compile_context>
chip_gen: v5e
topology: v5e:2x2
jax: 0.10.0
libtpu: 0.0.40
codegen_flags: <defaults>
</compile_context>

<pallas_src>
import functools

import jax
import jax.numpy as jnp
from jax import lax
from jax.experimental import pallas as pl
from jax.experimental.pallas import tpu as pltpu


def _round_up(x, m):
    return ((x + m - 1) // m) * m


def _vmem_limit_bytes(tile_bytes):
    # 1.5x headroom + 2 MiB for Mosaic internals, capped at v7x's 64 MiB VMEM.
    return int(min(max(int(tile_bytes * 1.5) + (2 << 20), 4 << 20), 64 << 20))


def _resident_spec(block_shape, index_map):
    """BlockSpec for a constant-index (resident) weight/bias block.

    Single-buffered (pl.Buffered(1)) so it is DMA'd once and does not pay the
    default double-buffered VMEM footprint (matters at H >= 2048 on v7x).
    Falls back to a plain BlockSpec on Pallas versions without pipeline_mode.
    """
    try:
        return pl.BlockSpec(block_shape, index_map,
                            pipeline_mode=pl.Buffered(1))
    except (TypeError, AttributeError):
        return pl.BlockSpec(block_shape, index_map)


# ---------------------------------------------------------------------------
# Kernel 1: data-parallel fact projection  X = facts @ [Wr | W] + [br+bur | bw]
# Tiled over (M, N); add a K axis + f32 VMEM accumulator if D ever gets large.
# ---------------------------------------------------------------------------
def _fact_proj_kernel(x_ref, w_ref, b_ref, o_ref):
    o_ref[...] = (
        jnp.dot(x_ref[...], w_ref[...], preferred_element_type=jnp.float32)
        + b_ref[...]
    ).astype(o_ref.dtype)


# ---------------------------------------------------------------------------
# Kernel 2: sequential attention-GRU recurrence over sequence chunks.
# Grid = (batch_tiles [parallel], seq_chunks [arbitrary]).
# ---------------------------------------------------------------------------
def _attngru_seq_kernel(x_ref, g_ref, ucat_ref, ubias_ref, out_ref, h_scratch,
                        *, unroll):
    c = pl.program_id(1)

    @pl.when(c == 0)
    def _():
        h_scratch[...] = jnp.zeros_like(h_scratch)   # h_0 = 0 per batch tile

    tb, hdim = h_scratch.shape
    u_cat = ucat_ref[...]                 # (H, 2H) = [Ur | U] (resident)
    # Hoisted once per chunk: JAX does not CSE broadcast_in_dim inside the loop.
    bu_b = jnp.broadcast_to(ubias_ref[...], (tb, hdim))   # (tb, H) f32
    s_len = x_ref.shape[0]

    def step(t, h_prev):
        x_t = x_ref[t].astype(jnp.float32)   # (tb, 2H) = [Wr f+br+bur | W f+bw]
        g_t = g_ref[t]                       # (tb, 1)
        # One fused h-side matmul per step, f32 accumulation.
        z = jnp.dot(h_prev.astype(u_cat.dtype), u_cat,
                    preferred_element_type=jnp.float32)
        r = jax.nn.sigmoid(x_t[:, :hdim] + z[:, :hdim])
        h_tilda = jnp.tanh(x_t[:, hdim:] + r * (z[:, hdim:] + bu_b))
        # h + g*(h~ - h)  ==  g*h~ + (1-g)*h, one fewer multiply on the chain.
        return h_prev + g_t * (h_tilda - h_prev)

    h = lax.fori_loop(0, s_len, step, h_scratch[...], unroll=unroll)
    h_scratch[...] = h

    @pl.when(c == pl.num_programs(1) - 1)
    def _():
        out_ref[...] = h.astype(out_ref.dtype)


# ---------------------------------------------------------------------------
# Wrapper
# ---------------------------------------------------------------------------
@functools.partial(
    jax.jit,
    static_argnames=("s_chunk", "proj_tm", "proj_tn", "compute_dtype",
                     "xproj_dtype", "recur_dtype", "num_batch_tiles"))
def attn_gru(facts, G, params, *, s_chunk=16, proj_tm=512, proj_tn=512,
             compute_dtype=jnp.float32, xproj_dtype=None, recur_dtype=None,
             num_batch_tiles=1):
    """facts: (B, S, D) f32, G: (B, S) f32.  Returns C: (B, H) f32.

    compute_dtype: matmul-operand dtype for the fact projection (kernel 1).
    xproj_dtype:   HBM dtype of the X intermediate (default: compute_dtype).
    recur_dtype:   matmul-operand dtype of the h-side dot in the recurrence
                   (default: compute_dtype; keep f32 on v5e).
    num_batch_tiles: leading 'parallel' grid axis of kernel 2 (set 2 on v7x).
    """
    B, S, D = facts.shape
    H = params["Wr"].shape[1]

    xp_dtype = jnp.dtype(xproj_dtype if xproj_dtype is not None else compute_dtype)
    rc_dtype = jnp.dtype(recur_dtype if recur_dtype is not None else compute_dtype)

    # ---- enforce TPU-friendly padding in the wrapper (not on the caller) ---
    nb = max(1, int(num_batch_tiles))
    B_pad = _round_up(B, 8 * nb)
    tb = B_pad // nb
    H_pad = _round_up(H, 128)
    D_pad = _round_up(D, 128)
    N2 = 2 * H_pad                                   # always a multiple of 256

    def pad2(a, rows, cols):
        return jnp.pad(a, ((0, rows - a.shape[0]), (0, cols - a.shape[1])))

    Wr = pad2(params["Wr"], D_pad, H_pad)
    W = pad2(params["W"], D_pad, H_pad)
    Ur = pad2(params["Ur"], H_pad, H_pad)
    U = pad2(params["U"], H_pad, H_pad)
    br = pad2(params["br"], 1, H_pad)
    bur = pad2(params["bur"], 1, H_pad)
    bw = pad2(params["bw"], 1, H_pad)
    bu = pad2(params["bu"], 1, H_pad)

    # Fold / fuse parameters.
    w_cat = jnp.concatenate([Wr, W], axis=1)         # (D_pad, 2H_pad)
    b_cat = jnp.concatenate([br + bur, bw], axis=1)  # (1, 2H_pad)
    u_cat = jnp.concatenate([Ur, U], axis=1)         # (H_pad, 2H_pad)
    u_bias = bu                                      # (1, H_pad), hidden half only

    # ---- pad S to a multiple of s_chunk; a g == 0 step is the identity ----
    s_chunk = max(1, min(s_chunk, S))
    s_pad = _round_up(S, s_chunk)
    facts_sbd = jnp.transpose(facts, (1, 0, 2))      # (S, B, D)
    facts_sbd = jnp.pad(
        facts_sbd, ((0, s_pad - S), (0, B_pad - B), (0, D_pad - D)))
    g_sb = jnp.pad(jnp.transpose(G, (1, 0)),
                   ((0, s_pad - S), (0, B_pad - B)))
    g_sb1 = g_sb.reshape(s_pad, B_pad, 1)            # padded gates are 0 -> identity

    # ---- kernel 1: parallel M/N-tiled projection ---------------------------
    M = s_pad * B_pad
    x2d = facts_sbd.reshape(M, D_pad).astype(compute_dtype)
    tm = min(_round_up(proj_tm, 8), _round_up(M, 8))
    m_pad = _round_up(M, tm)
    x2d = jnp.pad(x2d, ((0, m_pad - M), (0, 0)))

    if N2 <= proj_tn:
        tn = N2
    elif proj_tn >= 512 and N2 % 512 == 0:
        tn = 512
    else:
        tn = 256

    isz_c = jnp.dtype(compute_dtype).itemsize
    isz_x = xp_dtype.itemsize
    isz_r = rc_dtype.itemsize

    vmem1 = _vmem_limit_bytes(
        2 * tm * D_pad * isz_c        # x blocks (double buffered)
        + 2 * D_pad * tn * isz_c      # weight blocks
        + 2 * tn * 4                  # bias blocks
        + 2 * tm * tn * isz_x)        # out blocks
    cost1 = pl.CostEstimate(
        flops=2 * m_pad * D_pad * N2,
        transcendentals=0,
        bytes_accessed=m_pad * D_pad * isz_c
        + (m_pad // tm) * D_pad * N2 * isz_c
        + m_pad * N2 * isz_x)

    proj = pl.pallas_call(
        _fact_proj_kernel,
        out_shape=jax.ShapeDtypeStruct((m_pad, N2), xp_dtype),
        grid_spec=pltpu.PrefetchScalarGridSpec(
            num_scalar_prefetch=0,
            grid=(m_pad // tm, N2 // tn),
            in_specs=[
                pl.BlockSpec((tm, D_pad), lambda i, j: (i, 0)),
                pl.BlockSpec((D_pad, tn), lambda i, j: (0, j)),
                pl.BlockSpec((1, tn), lambda i, j: (0, j)),
            ],
            out_specs=pl.BlockSpec((tm, tn), lambda i, j: (i, j)),
        ),
        compiler_params=pltpu.CompilerParams(
            dimension_semantics=("parallel", "parallel"),
            vmem_limit_bytes=vmem1),
        cost_estimate=cost1,
    )(x2d, w_cat.astype(compute_dtype), b_cat)
    x_proj = proj[:M].reshape(s_pad, B_pad, N2)      # (S, B, 2H) xp_dtype

    # ---- kernel 2: sequential recurrence, batch-tiled on a parallel axis ---
    nc = s_pad // s_chunk
    unroll = int(max(1, min(s_chunk, 8)))            # cap unroll: vreg pressure

    vmem2 = _vmem_limit_bytes(
        H_pad * N2 * isz_r            # [Ur|U], single-buffered
        + H_pad * 4                   # bu
        + 2 * s_chunk * tb * N2 * isz_x
        + 2 * s_chunk * tb * 4
        + 2 * tb * H_pad * 4          # out
        + tb * H_pad * 4)             # h scratch
    cost2 = pl.CostEstimate(
        flops=2 * s_pad * B_pad * H_pad * N2 + 10 * s_pad * B_pad * H_pad,
        transcendentals=2 * s_pad * B_pad * H_pad,
        bytes_accessed=s_pad * B_pad * N2 * isz_x + s_pad * B_pad * 4
        + H_pad * N2 * isz_r + H_pad * 4 + B_pad * H_pad * 4)

    grid_spec = pltpu.PrefetchScalarGridSpec(
        num_scalar_prefetch=0,
        grid=(nb, nc),
        in_specs=[
            pl.BlockSpec((s_chunk, tb, N2), lambda b, c: (c, b, 0)),   # X chunk
            pl.BlockSpec((s_chunk, tb, 1), lambda b, c: (c, b, 0)),    # gates
            _resident_spec((H_pad, N2), lambda b, c: (0, 0)),          # [Ur|U]
            _resident_spec((1, H_pad), lambda b, c: (0, 0)),           # bu
        ],
        out_specs=pl.BlockSpec((tb, H_pad), lambda b, c: (b, 0)),
        scratch_shapes=[pltpu.VMEM((tb, H_pad), jnp.float32)],
    )

    out = pl.pallas_call(
        functools.partial(_attngru_seq_kernel, unroll=unroll),
        out_shape=jax.ShapeDtypeStruct((B_pad, H_pad), jnp.float32),
        grid_spec=grid_spec,
        compiler_params=pltpu.CompilerParams(
            dimension_semantics=("parallel", "arbitrary"),
            vmem_limit_bytes=vmem2),
        cost_estimate=cost2,
    )(x_proj, g_sb1, u_cat.astype(rc_dtype), u_bias)

    return out[:B, :H]


# ---------------------------------------------------------------------------
# Pure-JAX reference replicating the PyTorch forward
# ---------------------------------------------------------------------------
def attn_gru_ref(facts, G, params):
    B, S, D = facts.shape
    H = params["Wr"].shape[1]
    h = jnp.zeros((B, H), jnp.float32)
    for sen in range(S):
        fact = facts[:, sen, :]
        g = G[:, sen][:, None]
        r = jax.nn.sigmoid(fact @ params["Wr"] + params["br"]
                           + h @ params["Ur"] + params["bur"])
        h_tilda = jnp.tanh(fact @ params["W"] + params["bw"]
                           + r * (h @ params["U"] + params["bu"]))
        h = g * h_tilda + (1.0 - g) * h
    return h


def make_params(key, input_size, hidden_size):
    """Deterministic init mimicking the module's __init__ (weights stored as
    (in, out) so the kernel computes x @ W + b)."""
    ks = jax.random.split(key, 8)

    def xavier(k, fan_in, fan_out):
        std = (2.0 / (fan_in + fan_out)) ** 0.5
        return std * jax.random.normal(k, (fan_in, fan_out), jnp.float32)

    def bias(k, fan_in, fan_out):
        bound = 1.0 / (fan_in ** 0.5)
        return jax.random.uniform(k, (1, fan_out), jnp.float32, -bound, bound)

    D, H = input_size, hidden_size
    return {
        "Wr": xavier(ks[0], D, H), "br": bias(ks[1], D, H),
        "Ur": xavier(ks[2], H, H), "bur": bias(ks[3], H, H),
        "W":  xavier(ks[4], D, H), "bw": bias(ks[5], D, H),
        "U":  xavier(ks[6], H, H), "bu": bias(ks[7], H, H),
    }


if __name__ == "__main__":
    # The PyTorch module only works when input_size == hidden_size
    # (h_0 is expanded to fact's shape and fed through Ur/U).
    B, S, D = 2, 8, 32
    H = D

    key = jax.random.PRNGKey(0)
    k_facts, k_g, k_params = jax.random.split(key, 3)
    facts = jax.random.normal(k_facts, (B, S, D), jnp.float32)
    G = jax.nn.softmax(jax.random.normal(k_g, (B, S), jnp.float32), axis=-1)
    params = make_params(k_params, D, H)

    C_ref = attn_gru_ref(facts, G, params)

    # f32 everywhere (v5e-friendly): tight tolerance.
    C = jax.block_until_ready(attn_gru(facts, G, params, s_chunk=4))
    assert C.shape == (B, H)
    err = float(jnp.max(jnp.abs(C - C_ref)))
    assert err < 1e-4, f"f32 max err {err}"

    # bf16 matmul operands + bf16 x_proj intermediate (v6e/v7x MXU-native),
    # f32 accumulation and f32 element-wise gating.
    C_bf16 = jax.block_until_ready(
        attn_gru(facts, G, params, s_chunk=4, compute_dtype=jnp.bfloat16))
    err = float(jnp.max(jnp.abs(C_bf16 - C_ref)))
    assert err < 1e-1, f"bf16 max err {err}"

    # v7x-style: two 'parallel' batch tiles on the recurrence; bf16 projection
    # but f32 h-side matmul operands (v5e-safe recurrence path exercised too).
    C_bt = jax.block_until_ready(
        attn_gru(facts, G, params, s_chunk=4, compute_dtype=jnp.bfloat16,
                 recur_dtype=jnp.float32, num_batch_tiles=2))
    err = float(jnp.max(jnp.abs(C_bt - C_ref)))
    assert err < 1e-1, f"bf16/batch-tiled max err {err}"

    print("KERNEL_OK")
</pallas_src>

<mosaic_0001>
module attributes {stable_mosaic.version = 11 : i64} {
  func.func @_fact_proj_kernel(%arg0: i32, %arg1: i32, %arg2: memref<64x128xf32, #tpu.memory_space<vmem>>, %arg3: memref<128x256xf32, #tpu.memory_space<vmem>>, %arg4: memref<1x256xf32, #tpu.memory_space<vmem>>, %arg5: memref<64x256xf32, #tpu.memory_space<vmem>>) attributes {dimension_semantics = [#tpu.dimension_semantics<parallel>, #tpu.dimension_semantics<parallel>], iteration_bounds = array<i64: 1, 1>, scalar_prefetch = 0 : i64, scratch_operands = 0 : i64, tpu.core_type = #tpu.core_type<tc>, window_params = [{transform_indices = @transform_0, window_bounds = array<i64: 64, 128>}, {transform_indices = @transform_1, window_bounds = array<i64: 128, 256>}, {transform_indices = @transform_2, window_bounds = array<i64: 1, 256>}, {transform_indices = @transform_3, window_bounds = array<i64: 64, 256>}]} {
    %c0 = arith.constant 0 : index
    %c0_0 = arith.constant 0 : index
    %0 = vector.load %arg2[%c0, %c0_0] : memref<64x128xf32, #tpu.memory_space<vmem>>, vector<64x128xf32>
    %c0_1 = arith.constant 0 : index
    %c0_2 = arith.constant 0 : index
    %1 = vector.load %arg3[%c0_1, %c0_2] : memref<128x256xf32, #tpu.memory_space<vmem>>, vector<128x256xf32>
    %cst = arith.constant dense<0.000000e+00> : vector<64x256xf32>
    %2 = tpu.matmul %0, %1, %cst {dimension_numbers = #tpu.dot_dimension_numbers<[1], [0], [0], [1], [0, 0, 1, 1], [], []>} : vector<64x128xf32>, vector<128x256xf32>, vector<64x256xf32> -> vector<64x256xf32>
    %c0_3 = arith.constant 0 : index
    %c0_4 = arith.constant 0 : index
    %3 = vector.load %arg4[%c0_3, %c0_4] : memref<1x256xf32, #tpu.memory_space<vmem>>, vector<1x256xf32>
    %4 = vector.broadcast %3 : vector<1x256xf32> to vector<64x256xf32>
    %5 = arith.addf %2, %4 : vector<64x256xf32>
    %c0_5 = arith.constant 0 : index
    %c0_6 = arith.constant 0 : index
    %6 = vector.load %arg5[%c0_5, %c0_6] : memref<64x256xf32, #tpu.memory_space<vmem>>, vector<64x256xf32>
    tpu.vector_store %arg5[%c0_5, %c0_6], %5 {strides = array<i32>} : memref<64x256xf32, #tpu.memory_space<vmem>>, vector<64x256xf32>,
    return
  }
  func.func @transform_0(%arg0: i32, %arg1: i32) -> (i32, i32) {
    %c0_i32 = arith.constant 0 : i32
    %c0_i32_0 = arith.constant 0 : i32
    return %arg0, %c0_i32 : i32, i32
  }
  func.func @transform_1(%arg0: i32, %arg1: i32) -> (i32, i32) {
    %c0_i32 = arith.constant 0 : i32
    %c0_i32_0 = arith.constant 0 : i32
    return %c0_i32, %arg1 : i32, i32
  }
  func.func @transform_2(%arg0: i32, %arg1: i32) -> (i32, i32) {
    %c0_i32 = arith.constant 0 : i32
    %c0_i32_0 = arith.constant 0 : i32
    return %c0_i32, %arg1 : i32, i32
  }
  func.func @transform_3(%arg0: i32, %arg1: i32) -> (i32, i32) {
    %c0_i32 = arith.constant 0 : i32
    return %arg0, %arg1 : i32, i32
  }
}

module attributes {stable_mosaic.version = 11 : i64} {
  func.func @_attngru_seq_kernel(%arg0: i32, %arg1: i32, %arg2: memref<4x8x256xf32, #tpu.memory_space<vmem>>, %arg3: memref<4x8x1xf32, #tpu.memory_space<vmem>>, %arg4: memref<128x256xf32, #tpu.memory_space<vmem>>, %arg5: memref<1x128xf32, #tpu.memory_space<vmem>>, %arg6: memref<8x128xf32, #tpu.memory_space<vmem>>, %arg7: memref<8x128xf32, #tpu.memory_space<vmem>>) attributes {dimension_semantics = [#tpu.dimension_semantics<parallel>, #tpu.dimension_semantics<arbitrary>], iteration_bounds = array<i64: 1, 2>, scalar_prefetch = 0 : i64, scratch_operands = 1 : i64, tpu.core_type = #tpu.core_type<tc>, window_params = [{transform_indices = @transform_0, window_bounds = array<i64: 4, 8, 256>}, {transform_indices = @transform_1, window_bounds = array<i64: 4, 8, 1>}, {pipeline_mode = #tpu.pipeline_mode<synchronous>, transform_indices = @transform_2, window_bounds = array<i64: 128, 256>}, {pipeline_mode = #tpu.pipeline_mode<synchronous>, transform_indices = @transform_3, window_bounds = array<i64: 1, 128>}, {transform_indices = @transform_4, window_bounds = array<i64: 8, 128>}]} {
    %c0_i32 = arith.constant 0 : i32
    %0 = arith.cmpi eq, %arg1, %c0_i32 : i32
    %1 = arith.extui %0 : i1 to i32
    %c0_i32_0 = arith.constant 0 : i32
    %2 = arith.cmpi ne, %1, %c0_i32_0 : i32
    scf.if %2 {
      %cst_34 = arith.constant 0.000000e+00 : f32
      %112 = vector.broadcast %cst_34 : f32 to vector<8x128xf32>
      %c0_35 = arith.constant 0 : index
      %c0_36 = arith.constant 0 : index
      %113 = vector.load %arg7[%c0_35, %c0_36] : memref<8x128xf32, #tpu.memory_space<vmem>>, vector<8x128xf32>
      tpu.vector_store %arg7[%c0_35, %c0_36], %112 {strides = array<i32>} : memref<8x128xf32, #tpu.memory_space<vmem>>, vector<8x128xf32>,
    } else {
    }
    %c0 = arith.constant 0 : index
    %c0_1 = arith.constant 0 : index
    %3 = vector.load %arg4[%c0, %c0_1] : memref<128x256xf32, #tpu.memory_space<vmem>>, vector<128x256xf32>
    %c0_2 = arith.constant 0 : index
    %c0_3 = arith.constant 0 : index
    %4 = vector.load %arg5[%c0_2, %c0_3] : memref<1x128xf32, #tpu.memory_space<vmem>>, vector<1x128xf32>
    %5 = vector.shape_cast %4 : vector<1x128xf32> to vector<1x128xf32>
    %6 = vector.broadcast %5 : vector<1x128xf32> to vector<8x128xf32>
    %c0_4 = arith.constant 0 : index
    %c0_5 = arith.constant 0 : index
    %7 = vector.load %arg7[%c0_4, %c0_5] : memref<8x128xf32, #tpu.memory_space<vmem>>, vector<8x128xf32>
    %c0_i32_6 = arith.constant 0 : i32
    %8 = arith.index_cast %c0_i32_6 : i32 to index
    %c0_7 = arith.constant 0 : index
    %c0_8 = arith.constant 0 : index
    %9 = vector.load %arg2[%8, %c0_7, %c0_8] : memref<4x8x256xf32, #tpu.memory_space<vmem>>, vector<1x8x256xf32>
    %10 = vector.shape_cast %9 : vector<1x8x256xf32> to vector<8x256xf32>
    %11 = arith.index_cast %c0_i32_6 : i32 to index
    %c0_9 = arith.constant 0 : index
    %c0_10 = arith.constant 0 : index
    %12 = vector.load %arg3[%11, %c0_9, %c0_10] : memref<4x8x1xf32, #tpu.memory_space<vmem>>, vector<1x8x1xf32>
    %13 = vector.shape_cast %12 : vector<1x8x1xf32> to vector<8x1xf32>
    %cst = arith.constant dense<0.000000e+00> : vector<8x256xf32>
    %14 = tpu.matmul %7, %3, %cst {dimension_numbers = #tpu.dot_dimension_numbers<[1], [0], [0], [1], [0, 0, 1, 1], [], []>} : vector<8x128xf32>, vector<128x256xf32>, vector<8x256xf32> -> vector<8x256xf32>
    %15 = vector.extract_strided_slice %10 {offsets = [0, 0], sizes = [8, 128], strides = [1, 1]} : vector<8x256xf32> to vector<8x128xf32>
    %16 = vector.extract_strided_slice %14 {offsets = [0, 0], sizes = [8, 128], strides = [1, 1]} : vector<8x256xf32> to vector<8x128xf32>
    %17 = arith.addf %15, %16 : vector<8x128xf32>
    %18 = arith.negf %17 : vector<8x128xf32>
    %19 = math.exp %18 : vector<8x128xf32>
    %cst_11 = arith.constant 1.000000e+00 : f32
    %20 = vector.broadcast %cst_11 : f32 to vector<8x128xf32>
    %21 = arith.addf %20, %19 : vector<8x128xf32>
    %22 = arith.divf %20, %21 : vector<8x128xf32>
    %23 = vector.extract_strided_slice %10 {offsets = [0, 128], sizes = [8, 128], strides = [1, 1]} : vector<8x256xf32> to vector<8x128xf32>
    %24 = vector.extract_strided_slice %14 {offsets = [0, 128], sizes = [8, 128], strides = [1, 1]} : vector<8x256xf32> to vector<8x128xf32>
    %25 = arith.addf %24, %6 : vector<8x128xf32>
    %26 = arith.mulf %22, %25 : vector<8x128xf32>
    %27 = arith.addf %23, %26 : vector<8x128xf32>
    %28 = math.tanh %27 : vector<8x128xf32>
    %29 = arith.subf %28, %7 : vector<8x128xf32>
    %30 = vector.broadcast %13 : vector<8x1xf32> to vector<8x128xf32>
    %31 = arith.mulf %30, %29 : vector<8x128xf32>
    %32 = arith.addf %7, %31 : vector<8x128xf32>
    %c1_i32 = arith.constant 1 : i32
    %33 = arith.index_cast %c1_i32 : i32 to index
    %c0_12 = arith.constant 0 : index
    %c0_13 = arith.constant 0 : index
    %34 = vector.load %arg2[%33, %c0_12, %c0_13] : memref<4x8x256xf32, #tpu.memory_space<vmem>>, vector<1x8x256xf32>
    %35 = vector.shape_cast %34 : vector<1x8x256xf32> to vector<8x256xf32>
    %36 = arith.index_cast %c1_i32 : i32 to index
    %c0_14 = arith.constant 0 : index
    %c0_15 = arith.constant 0 : index
    %37 = vector.load %arg3[%36, %c0_14, %c0_15] : memref<4x8x1xf32, #tpu.memory_space<vmem>>, vector<1x8x1xf32>
    %38 = vector.shape_cast %37 : vector<1x8x1xf32> to vector<8x1xf32>
    %cst_16 = arith.constant dense<0.000000e+00> : vector<8x256xf32>
    %39 = tpu.matmul %32, %3, %cst_16 {dimension_numbers = #tpu.dot_dimension_numbers<[1], [0], [0], [1], [0, 0, 1, 1], [], []>} : vector<8x128xf32>, vector<128x256xf32>, vector<8x256xf32> -> vector<8x256xf32>
    %40 = vector.extract_strided_slice %35 {offsets = [0, 0], sizes = [8, 128], strides = [1, 1]} : vector<8x256xf32> to vector<8x128xf32>
    %41 = vector.extract_strided_slice %39 {offsets = [0, 0], sizes = [8, 128], strides = [1, 1]} : vector<8x256xf32> to vector<8x128xf32>
    %42 = arith.addf %40, %41 : vector<8x128xf32>
    %43 = arith.negf %42 : vector<8x128xf32>
    %44 = math.exp %43 : vector<8x128xf32>
    %cst_17 = arith.constant 1.000000e+00 : f32
    %45 = vector.broadcast %cst_17 : f32 to vector<8x128xf32>
    %46 = arith.addf %45, %44 : vector<8x128xf32>
    %47 = arith.divf %45, %46 : vector<8x128xf32>
    %48 = vector.extract_strided_slice %35 {offsets = [0, 128], sizes = [8, 128], strides = [1, 1]} : vector<8x256xf32> to vector<8x128xf32>
    %49 = vector.extract_strided_slice %39 {offsets = [0, 128], sizes = [8, 128], strides = [1, 1]} : vector<8x256xf32> to vector<8x128xf32>
    %50 = arith.addf %49, %6 : vector<8x128xf32>
    %51 = arith.mulf %47, %50 : vector<8x128xf32>
    %52 = arith.addf %48, %51 : vector<8x128xf32>
    %53 = math.tanh %52 : vector<8x128xf32>
    %54 = arith.subf %53, %32 : vector<8x128xf32>
    %55 = vector.broadcast %38 : vector<8x1xf32> to vector<8x128xf32>
    %56 = arith.mulf %55, %54 : vector<8x128xf32>
    %57 = arith.addf %32, %56 : vector<8x128xf32>
    %c2_i32 = arith.constant 2 : i32
    %58 = arith.index_cast %c2_i32 : i32 to index
    %c0_18 = arith.constant 0 : index
    %c0_19 = arith.constant 0 : index
    %59 = vector.load %arg2[%58, %c0_18, %c0_19] : memref<4x8x256xf32, #tpu.memory_space<vmem>>, vector<1x8x256xf32>
    %60 = vector.shape_cast %59 : vector<1x8x256xf32> to vector<8x256xf32>
    %61 = arith.index_cast %c2_i32 : i32 to index
    %c0_20 = arith.constant 0 : index
    %c0_21 = arith.constant 0 : index
    %62 = vector.load %arg3[%61, %c0_20, %c0_21] : memref<4x8x1xf32, #tpu.memory_space<vmem>>, vector<1x8x1xf32>
    %63 = vector.shape_cast %62 : vector<1x8x1xf32> to vector<8x1xf32>
    %cst_22 = arith.constant dense<0.000000e+00> : vector<8x256xf32>
    %64 = tpu.matmul %57, %3, %cst_22 {dimension_numbers = #tpu.dot_dimension_numbers<[1], [0], [0], [1], [0, 0, 1, 1], [], []>} : vector<8x128xf32>, vector<128x256xf32>, vector<8x256xf32> -> vector<8x256xf32>
    %65 = vector.extract_strided_slice %60 {offsets = [0, 0], sizes = [8, 128], strides = [1, 1]} : vector<8x256xf32> to vector<8x128xf32>
    %66 = vector.extract_strided_slice %64 {offsets = [0, 0], sizes = [8, 128], strides = [1, 1]} : vector<8x256xf32> to vector<8x128xf32>
    %67 = arith.addf %65, %66 : vector<8x128xf32>
    %68 = arith.negf %67 : vector<8x128xf32>
    %69 = math.exp %68 : vector<8x128xf32>
    %cst_23 = arith.constant 1.000000e+00 : f32
    %70 = vector.broadcast %cst_23 : f32 to vector<8x128xf32>
    %71 = arith.addf %70, %69 : vector<8x128xf32>
    %72 = arith.divf %70, %71 : vector<8x128xf32>
    %73 = vector.extract_strided_slice %60 {offsets = [0, 128], sizes = [8, 128], strides = [1, 1]} : vector<8x256xf32> to vector<8x128xf32>
    %74 = vector.extract_strided_slice %64 {offsets = [0, 128], sizes = [8, 128], strides = [1, 1]} : vector<8x256xf32> to vector<8x128xf32>
    %75 = arith.addf %74, %6 : vector<8x128xf32>
    %76 = arith.mulf %72, %75 : vector<8x128xf32>
    %77 = arith.addf %73, %76 : vector<8x128xf32>
    %78 = math.tanh %77 : vector<8x128xf32>
    %79 = arith.subf %78, %57 : vector<8x128xf32>
    %80 = vector.broadcast %63 : vector<8x1xf32> to vector<8x128xf32>
    %81 = arith.mulf %80, %79 : vector<8x128xf32>
    %82 = arith.addf %57, %81 : vector<8x128xf32>
    %c3_i32 = arith.constant 3 : i32
    %83 = arith.index_cast %c3_i32 : i32 to index
    %c0_24 = arith.constant 0 : index
    %c0_25 = arith.constant 0 : index
    %84 = vector.load %arg2[%83, %c0_24, %c0_25] : memref<4x8x256xf32, #tpu.memory_space<vmem>>, vector<1x8x256xf32>
    %85 = vector.shape_cast %84 : vector<1x8x256xf32> to vector<8x256xf32>
    %86 = arith.index_cast %c3_i32 : i32 to index
    %c0_26 = arith.constant 0 : index
    %c0_27 = arith.constant 0 : index
    %87 = vector.load %arg3[%86, %c0_26, %c0_27] : memref<4x8x1xf32, #tpu.memory_space<vmem>>, vector<1x8x1xf32>
    %88 = vector.shape_cast %87 : vector<1x8x1xf32> to vector<8x1xf32>
    %cst_28 = arith.constant dense<0.000000e+00> : vector<8x256xf32>
    %89 = tpu.matmul %82, %3, %cst_28 {dimension_numbers = #tpu.dot_dimension_numbers<[1], [0], [0], [1], [0, 0, 1, 1], [], []>} : vector<8x128xf32>, vector<128x256xf32>, vector<8x256xf32> -> vector<8x256xf32>
    %90 = vector.extract_strided_slice %85 {offsets = [0, 0], sizes = [8, 128], strides = [1, 1]} : vector<8x256xf32> to vector<8x128xf32>
    %91 = vector.extract_strided_slice %89 {offsets = [0, 0], sizes = [8, 128], strides = [1, 1]} : vector<8x256xf32> to vector<8x128xf32>
    %92 = arith.addf %90, %91 : vector<8x128xf32>
    %93 = arith.negf %92 : vector<8x128xf32>
    %94 = math.exp %93 : vector<8x128xf32>
    %cst_29 = arith.constant 1.000000e+00 : f32
    %95 = vector.broadcast %cst_29 : f32 to vector<8x128xf32>
    %96 = arith.addf %95, %94 : vector<8x128xf32>
    %97 = arith.divf %95, %96 : vector<8x128xf32>
    %98 = vector.extract_strided_slice %85 {offsets = [0, 128], sizes = [8, 128], strides = [1, 1]} : vector<8x256xf32> to vector<8x128xf32>
    %99 = vector.extract_strided_slice %89 {offsets = [0, 128], sizes = [8, 128], strides = [1, 1]} : vector<8x256xf32> to vector<8x128xf32>
    %100 = arith.addf %99, %6 : vector<8x128xf32>
    %101 = arith.mulf %97, %100 : vector<8x128xf32>
    %102 = arith.addf %98, %101 : vector<8x128xf32>
    %103 = math.tanh %102 : vector<8x128xf32>
    %104 = arith.subf %103, %82 : vector<8x128xf32>
    %105 = vector.broadcast %88 : vector<8x1xf32> to vector<8x128xf32>
    %106 = arith.mulf %105, %104 : vector<8x128xf32>
    %107 = arith.addf %82, %106 : vector<8x128xf32>
    %c4_i32 = arith.constant 4 : i32
    %c0_30 = arith.constant 0 : index
    %c0_31 = arith.constant 0 : index
    %108 = vector.load %arg7[%c0_30, %c0_31] : memref<8x128xf32, #tpu.memory_space<vmem>>, vector<8x128xf32>
    tpu.vector_store %arg7[%c0_30, %c0_31], %107 {strides = array<i32>} : memref<8x128xf32, #tpu.memory_space<vmem>>, vector<8x128xf32>,
    %c1_i32_32 = arith.constant 1 : i32
    %109 = arith.cmpi eq, %arg1, %c1_i32_32 : i32
    %110 = arith.extui %109 : i1 to i32
    %c0_i32_33 = arith.constant 0 : i32
    %111 = arith.cmpi ne, %110, %c0_i32_33 : i32
    scf.if %111 {
      %c0_34 = arith.constant 0 : index
      %c0_35 = arith.constant 0 : index
      %112 = vector.load %arg6[%c0_34, %c0_35] : memref<8x128xf32, #tpu.memory_space<vmem>>, vector<8x128xf32>
      tpu.vector_store %arg6[%c0_34, %c0_35], %107 {strides = array<i32>} : memref<8x128xf32, #tpu.memory_space<vmem>>, vector<8x128xf32>,
    } else {
    }
    return
  }
  func.func @transform_0(%arg0: i32, %arg1: i32) -> (i32, i32, i32) {
    %c0_i32 = arith.constant 0 : i32
    %c0_i32_0 = arith.constant 0 : i32
    return %arg1, %arg0, %c0_i32 : i32, i32, i32
  }
  func.func @transform_1(%arg0: i32, %arg1: i32) -> (i32, i32, i32) {
    %c0_i32 = arith.constant 0 : i32
    %c0_i32_0 = arith.constant 0 : i32
    return %arg1, %arg0, %c0_i32 : i32, i32, i32
  }
  func.func @transform_2(%arg0: i32, %arg1: i32) -> (i32, i32) {
    %c0_i32 = arith.constant 0 : i32
    %c0_i32_0 = arith.constant 0 : i32
    %c0_i32_1 = arith.constant 0 : i32
    return %c0_i32, %c0_i32_0 : i32, i32
  }
  func.func @transform_3(%arg0: i32, %arg1: i32) -> (i32, i32) {
    %c0_i32 = arith.constant 0 : i32
    %c0_i32_0 = arith.constant 0 : i32
    %c0_i32_1 = arith.constant 0 : i32
    return %c0_i32, %c0_i32_0 : i32, i32
  }
  func.func @transform_4(%arg0: i32, %arg1: i32) -> (i32, i32) {
    %c0_i32 = arith.constant 0 : i32
    %c0_i32_0 = arith.constant 0 : i32
    return %arg0, %c0_i32 : i32, i32
  }
}

</mosaic_0001>

<bundles_post_ra>
// kernel: attn_gru.2
= control target key start
LH: loop header
LB: loop body
LE: loop exit
PB: predicated region body
PF: predicated region fallthrough
CT: control target
= control target key end

     0   :  { %s385_s1 = inlined_call_operand.vmem [shape: f32[128,256], index: 1, kind: input, shape index: {}]   ;;  %s386_s0 = inlined_call_operand.vmem [shape: f32[64,128], index: 0, kind: input, shape index: {}]   ;;  %s387_s2 = inlined_call_operand.vmem [shape: f32[1,256], index: 2, kind: input, shape index: {}]   ;;  %s388_s3 = inlined_call_operand.vmem [shape: f32[64,256], index: 3, kind: output, shape index: {}]  }
   0x1   :  { %v52_v0 = vld [vmem:[%s385_s1 + $0xf0] sm:$0xff]  ;;  %v53_v1 = vld [vmem:[%s385_s1 + $0xf8] sm:$0xff]  ;;  %v50_v2 = vld [vmem:[%s385_s1 + $0xe0] sm:$0xff] }
   0x2   :  { %162 = vmatpush.msra.mxu2 %v52_v0  ;;  %178 = vmatpush.msra.mxu3 %v53_v1  ;;  %v51_v3 = vld [vmem:[%s385_s1 + $0xe8] sm:$0xff]  ;;  %v48_v4 = vld [vmem:[%s385_s1 + $0xd0] sm:$0xff]  ;;  %v49_v5 = vld [vmem:[%s385_s1 + $0xd8] sm:$0xff] }
   0x3   :  { %60 = vmatpush.msra.mxu0 %v52_v0  ;;  %101 = vmatpush.msra.mxu1 %v53_v1  ;;  %v46_v6 = vld [vmem:[%s385_s1 + $0xc0] sm:$0xff]  ;;  %v47_v7 = vld [vmem:[%s385_s1 + $0xc8] sm:$0xff]  ;;  %v44_v8 = vld [vmem:[%s385_s1 + $0xb0] sm:$0xff] }
   0x4   :  { %163 = vmatpush.msra.mxu2 %v50_v2  ;;  %179 = vmatpush.msra.mxu3 %v51_v3  ;;  %v45_v9 = vld [vmem:[%s385_s1 + $0xb8] sm:$0xff]  ;;  %v42_v10 = vld [vmem:[%s385_s1 + $0xa0] sm:$0xff]  ;;  %v43_v11 = vld [vmem:[%s385_s1 + $0xa8] sm:$0xff] }
   0x5   :  { %61 = vmatpush.msra.mxu0 %v50_v2  ;;  %102 = vmatpush.msra.mxu1 %v51_v3  ;;  %v40_v12 = vld [vmem:[%s385_s1 + $0x90] sm:$0xff]  ;;  %v41_v13 = vld [vmem:[%s385_s1 + $0x98] sm:$0xff]  ;;  %v38_v14 = vld [vmem:[%s385_s1 + $0x80] sm:$0xff] }
   0x6   :  { %164 = vmatpush.msra.mxu2 %v48_v4  ;;  %180 = vmatpush.msra.mxu3 %v49_v5  ;;  %v39_v15 = vld [vmem:[%s385_s1 + $0x88] sm:$0xff]  ;;  %v36_v16 = vld [vmem:[%s385_s1 + $0x70] sm:$0xff]  ;;  %v37_v17 = vld [vmem:[%s385_s1 + $0x78] sm:$0xff] }
   0x7   :  { %62 = vmatpush.msra.mxu0 %v48_v4  ;;  %103 = vmatpush.msra.mxu1 %v49_v5  ;;  %v34_v18 = vld [vmem:[%s385_s1 + $0x60] sm:$0xff]  ;;  %v35_v19 = vld [vmem:[%s385_s1 + $0x68] sm:$0xff]  ;;  %v32_v20 = vld [vmem:[%s385_s1 + $0x50] sm:$0xff] }
   0x8   :  { %165 = vmatpush.msra.mxu2 %v46_v6  ;;  %181 = vmatpush.msra.mxu3 %v47_v7  ;;  %v33_v21 = vld [vmem:[%s385_s1 + $0x58] sm:$0xff]  ;;  %v30_v22 = vld [vmem:[%s385_s1 + $0x40] sm:$0xff]  ;;  %v31_v23 = vld [vmem:[%s385_s1 + $0x48] sm:$0xff] }
   0x9   :  { %63 = vmatpush.msra.mxu0 %v46_v6  ;;  %104 = vmatpush.msra.mxu1 %v47_v7  ;;  %v28_v24 = vld [vmem:[%s385_s1 + $0x30] sm:$0xff]  ;;  %v29_v25 = vld [vmem:[%s385_s1 + $0x38] sm:$0xff]  ;;  %v26_v26 = vld [vmem:[%s385_s1 + $0x20] sm:$0xff] }
   0xa   :  { %166 = vmatpush.msra.mxu2 %v44_v8  ;;  %182 = vmatpush.msra.mxu3 %v45_v9  ;;  %v27_v27 = vld [vmem:[%s385_s1 + $0x28] sm:$0xff]  ;;  %v24_v28 = vld [vmem:[%s385_s1 + $0x10] sm:$0xff]  ;;  %v25_v29 = vld [vmem:[%s385_s1 + $0x18] sm:$0xff] }
   0xb   :  { %64 = vmatpush.msra.mxu0 %v44_v8  ;;  %105 = vmatpush.msra.mxu1 %v45_v9  ;;  %v22_v30 = vld [vmem:[%s385_s1] sm:$0xff]  ;;  %v23_v31 = vld [vmem:[%s385_s1 + $0x8] sm:$0xff]  ;;  %v20_v36 = vld [vmem:[%s386_s0 + $0x30] sm:$0xff] }
   0xc   :  { %167 = vmatpush.msra.mxu2 %v42_v10  ;;  %183 = vmatpush.msra.mxu3 %v43_v11  ;;  %v18_v32 = vld [vmem:[%s386_s0 + $0x20] sm:$0xff]  ;;  %v19_v34 = vld [vmem:[%s386_s0 + $0x28] sm:$0xff]  ;;  %v16_v37 = vld [vmem:[%s386_s0 + $0x10] sm:$0xff] }
   0xd   :  { %65 = vmatpush.msra.mxu0 %v42_v10  ;;  %106 = vmatpush.msra.mxu1 %v43_v11  ;;  %v14_v33 = vld [vmem:[%s386_s0] sm:$0xff]  ;;  %v15_v35 = vld [vmem:[%s386_s0 + $0x8] sm:$0xff]  ;;  %v21_v38 = vld [vmem:[%s386_s0 + $0x38] sm:$0xff] }
   0xe   :  { %168 = vmatpush.msra.mxu2 %v40_v12  ;;  %184 = vmatpush.msra.mxu3 %v41_v13  ;;  %v17_v39 = vld [vmem:[%s386_s0 + $0x18] sm:$0xff]  ;;  %v54_v40 = vld [vmem:[%s387_s2] sm:$0x3] }
   0xf   :  { %66 = vmatpush.msra.mxu0 %v40_v12  ;;  %107 = vmatpush.msra.mxu1 %v41_v13  ;;  %v56_v41 = vperm.slane %v54_v40, 0  ;;  %v57_v42 = vperm.slane %v54_v40, 1 }
  0x10   :  { %169 = vmatpush.msra.mxu2 %v38_v14  ;;  %185 = vmatpush.msra.mxu3 %v39_v15 }
  0x11   :  { %67 = vmatpush.msra.mxu0 %v38_v14  ;;  %108 = vmatpush.msra.mxu1 %v39_v15 }
  0x12   :  { %170 = vmatpush.msra.mxu2 %v36_v16  ;;  %186 = vmatpush.msra.mxu3 %v37_v17 }
  0x13   :  { %68 = vmatpush.msra.mxu0 %v36_v16  ;;  %109 = vmatpush.msra.mxu1 %v37_v17 }
  0x14   :  { %171 = vmatpush.msra.mxu2 %v34_v18  ;;  %187 = vmatpush.msra.mxu3 %v35_v19 }
  0x15   :  { %69 = vmatpush.msra.mxu0 %v34_v18  ;;  %110 = vmatpush.msra.mxu1 %v35_v19 }
  0x16   :  { %172 = vmatpush.msra.mxu2 %v32_v20  ;;  %188 = vmatpush.msra.mxu3 %v33_v21 }
  0x17   :  { %70 = vmatpush.msra.mxu0 %v32_v20  ;;  %111 = vmatpush.msra.mxu1 %v33_v21 }
  0x18   :  { %173 = vmatpush.msra.mxu2 %v30_v22  ;;  %189 = vmatpush.msra.mxu3 %v31_v23 }
  0x19   :  { %71 = vmatpush.msra.mxu0 %v30_v22  ;;  %112 = vmatpush.msra.mxu1 %v31_v23 }
  0x1a   :  { %174 = vmatpush.msra.mxu2 %v28_v24  ;;  %190 = vmatpush.msra.mxu3 %v29_v25 }
  0x1b   :  { %72 = vmatpush.msra.mxu0 %v28_v24  ;;  %113 = vmatpush.msra.mxu1 %v29_v25 }
  0x1c   :  { %175 = vmatpush.msra.mxu2 %v26_v26  ;;  %191 = vmatpush.msra.mxu3 %v27_v27 }
  0x1d   :  { %73 = vmatpush.msra.mxu0 %v26_v26  ;;  %114 = vmatpush.msra.mxu1 %v27_v27 }
  0x1e   :  { %176 = vmatpush.msra.mxu2 %v24_v28  ;;  %192 = vmatpush.msra.mxu3 %v25_v29 }
  0x1f   :  { %74 = vmatpush.msra.mxu0 %v24_v28  ;;  %115 = vmatpush.msra.mxu1 %v25_v29 }
  0x20   :  { %177 = vmatpush.msra.mxu2 %v22_v30  ;;  %193 = vmatpush.msra.mxu3 %v23_v31 }
  0x21   :  { %88 = vmatmul.f32.vlgmr.msra.gmra.mxu2 %v18_v32  ;;  %129 = vmatmul.f32.vlgmr.msra.gmra.mxu3 %v18_v32 }
  0x22   :  { %75 = vmatpush.msra.mxu0 %v22_v30  ;;  %116 = vmatpush.msra.mxu1 %v23_v31 }
  0x23   :  { %76 = vmatmul.f32.vlgmr.msra.gmra.mxu0 %v14_v33  ;;  %117 = vmatmul.f32.vlgmr.msra.gmra.mxu1 %v14_v33 }
  0x29   :  { %91 = vmatmul.f32.gmra.mxu2 %v19_v34  ;;  %132 = vmatmul.f32.gmra.mxu3 %v19_v34 }
  0x2b   :  { %79 = vmatmul.f32.gmra.mxu0 %v15_v35  ;;  %120 = vmatmul.f32.gmra.mxu1 %v15_v35 }
  0x31   :  { %94 = vmatmul.f32.gmra.mxu2 %v20_v36  ;;  %135 = vmatmul.f32.gmra.mxu3 %v20_v36 }
  0x33   :  { %82 = vmatmul.f32.gmra.mxu0 %v16_v37  ;;  %123 = vmatmul.f32.gmra.mxu1 %v16_v37 }
  0x39   :  { %97 = vmatmul.f32.gmra.mxu2 %v21_v38  ;;  %138 = vmatmul.f32.gmra.mxu3 %v21_v38 }
  0x3b   :  { %85 = vmatmul.f32.gmra.mxu0 %v17_v39  ;;  %126 = vmatmul.f32.gmra.mxu1 %v17_v39 }
  0xa0   :  { %v77_v43 = vpop.f32.mrf.mxu0  ;;  %v118_v44 = vpop.f32.mrf.mxu1 }
  0xa1   :  { %v78_v45 = vadd.f32 %v77_v43, %v56_v41  ;;  %v119_v46 = vadd.f32 %v118_v44, %v57_v42 }
  0xa3   :  { %142 = vst [vmem:[%s388_s3] sm:$0xff] %v78_v45 }
  0xa4   :  { %v89_v47 = vpop.f32.mrf.mxu2  ;;  %143 = vst [vmem:[%s388_s3 + $0x8] sm:$0xff] %v119_v46  ;;  %v130_v48 = vpop.f32.mrf.mxu3 }
  0xa5   :  { %v90_v49 = vadd.f32 %v89_v47, %v56_v41  ;;  %v131_v50 = vadd.f32 %v130_v48, %v57_v42 }
  0xa7   :  { %150 = vst [vmem:[%s388_s3 + $0x40] sm:$0xff] %v90_v49 }
  0xa8   :  { %151 = vst [vmem:[%s388_s3 + $0x48] sm:$0xff] %v131_v50  ;;  %v80_v51 = vpop.f32.mrf.mxu0  ;;  %v121_v52 = vpop.f32.mrf.mxu1 }
  0xa9   :  { %v81_v53 = vadd.f32 %v80_v51, %v56_v41  ;;  %v122_v54 = vadd.f32 %v121_v52, %v57_v42 }
  0xab   :  { %144 = vst [vmem:[%s388_s3 + $0x10] sm:$0xff] %v81_v53 }
  0xac   :  { %v92_v55 = vpop.f32.mrf.mxu2  ;;  %145 = vst [vmem:[%s388_s3 + $0x18] sm:$0xff] %v122_v54  ;;  %v133_v56 = vpop.f32.mrf.mxu3 }
  0xad   :  { %v93_v57 = vadd.f32 %v92_v55, %v56_v41  ;;  %v134_v58 = vadd.f32 %v133_v56, %v57_v42 }
  0xaf   :  { %152 = vst [vmem:[%s388_s3 + $0x50] sm:$0xff] %v93_v57 }
  0xb0   :  { %153 = vst [vmem:[%s388_s3 + $0x58] sm:$0xff] %v134_v58  ;;  %v83_v59 = vpop.f32.mrf.mxu0  ;;  %v124_v60 = vpop.f32.mrf.mxu1 }
  0xb1   :  { %v84_v61 = vadd.f32 %v83_v59, %v56_v41  ;;  %v125_v62 = vadd.f32 %v124_v60, %v57_v42 }
  0xb3   :  { %146 = vst [vmem:[%s388_s3 + $0x20] sm:$0xff] %v84_v61 }
  0xb4   :  { %v95_v63 = vpop.f32.mrf.mxu2  ;;  %147 = vst [vmem:[%s388_s3 + $0x28] sm:$0xff] %v125_v62  ;;  %v136_v0 = vpop.f32.mrf.mxu3 }
  0xb5   :  { %v96_v1 = vadd.f32 %v95_v63, %v56_v41  ;;  %v137_v2 = vadd.f32 %v136_v0, %v57_v42 }
  0xb7   :  { %154 = vst [vmem:[%s388_s3 + $0x60] sm:$0xff] %v96_v1 }
  0xb8   :  { %155 = vst [vmem:[%s388_s3 + $0x68] sm:$0xff] %v137_v2  ;;  %v86_v3 = vpop.f32.mrf.mxu0  ;;  %v127_v4 = vpop.f32.mrf.mxu1 }
  0xb9   :  { %v87_v5 = vadd.f32 %v86_v3, %v56_v41  ;;  %v128_v6 = vadd.f32 %v127_v4, %v57_v42 }
  0xbb   :  { %148 = vst [vmem:[%s388_s3 + $0x30] sm:$0xff] %v87_v5 }
  0xbc   :  { %v98_v7 = vpop.f32.mrf.mxu2  ;;  %149 = vst [vmem:[%s388_s3 + $0x38] sm:$0xff] %v128_v6  ;;  %v139_v8 = vpop.f32.mrf.mxu3 }
  0xbd   :  { %v99_v9 = vadd.f32 %v98_v7, %v56_v41  ;;  %v140_v10 = vadd.f32 %v139_v8, %v57_v42 }
  0xbf   :  { %156 = vst [vmem:[%s388_s3 + $0x70] sm:$0xff] %v99_v9 }
  0xc0   :  { %157 = vst [vmem:[%s388_s3 + $0x78] sm:$0xff] %v140_v10 }

// kernel: attn_gru.3
= control target key start
LH: loop header
LB: loop body
LE: loop exit
PB: predicated region body
PF: predicated region fallthrough
CT: control target
= control target key end

     0   :  { %s829_s15 = smov 0   ;;  %s831_s16 = smov 0   ;;  %s1191_s0 = inlined_call_operand.vmem [shape: f32[8,8,256], index: 0, kind: input, shape index: {}]   ;;  %s1192_s1 = inlined_call_operand.vmem [shape: f32[8,8,1], index: 1, kind: input, shape index: {}]   ;;  %s1193_s2 = inlined_call_operand.vmem [shape: f32[128,256], index: 2, kind: input, shape index: {}]   ;;  %s1194_s3 = inlined_call_operand.vmem [shape: f32[1,128], index: 3, kind: input, shape index: {}]   ;;  %s1195_s4 = inlined_call_operand.vmem [shape: f32[8,128], index: 4, kind: output, shape index: {}]  }
   0x1   :  { %s833_s17 = smov 0  }
   0x2 LB: > { %s23_s18 = sadd.s32 1, %s796_s16  ;;  %p700_p0 = scmp.ge.s32.totalorder %s800_s17, 1  ;;  %s800_s17 = sphi %s833_s17, %s14_s17   ;;  %s796_s16 = sphi %s831_s16, %s1197_s16   ;;  %s792_s15 = sphi %s829_s15, %s1196_s15  }
   0x3   : > { %p24_p1 = scmp.ge.s32.totalorder %s23_s18, 2  ;;  %p198_p2 = scmp.lt.s32.totalorder %s800_s17, 3 }
   0x5   : > { %s1199_s18 = smov (%p24_p1, %s23_s18), 0  ;;  %p199_p3 = pnand %p700_p0, %p198_p2 }
   0x6   : > { %s701_s19 = sshll.u32 (!%p199_p3), %s792_s15, 2  ;;  %p706_p5 = scmp.ne.s32.totalorder (!%p199_p3), %s792_s15, 0 }
   0x7   : > { %202 = sbr.rel (%p199_p3) target bundleno = 757 (0x2f5), region = 36  ;;  %p237_p4 = scmp.lt.s32.totalorder (!%p199_p3), %s701_s19, 7 }
   0xc   : > { %s1201_s19 = smov (!%p237_p4, %s701_s19), 7  ;;  %263 = sbr.rel (%p706_p5) target bundleno = 19 (0x13), region = 40 }
   0xd   : > { %s724_s20 = sshll.u32 %s1201_s19, 4  ;;  %s705_s21 = sshll.u32 %s1201_s19, 3 }
   0xe   : > { %s853_s24 = scalar_lea.vmem %s1191_s0, %s724_s20  ;;  %s858_s27 = scalar_lea.vmem %s1192_s1, %s705_s21 }
  0x11   : > { %v802_v0 = vmov 0.0  }
  0x12   : > { %264 = vst [vmem:[#allocation2] sm:$0xff] %v802_v0 }
  0x13 PF: > { %v864_v1 = vld [vmem:[%s1193_s2 + $0xf0] sm:$0xff]  ;;  %v869_v2 = vld [vmem:[%s1193_s2 + $0xe0] sm:$0xff]  ;;  %v889_v5 = vld [vmem:[%s1193_s2 + $0xf8] sm:$0xff]  ;;  %v803_v8 = vmov 0   ;;  %p720_p6 = scmp.ne.s32.totalorder %s792_s15, 1 }
  0x14   : > { %305 = vmatpush.msra.mxu0 %v864_v1  ;;  %382 = vmatpush.msra.mxu2 %v864_v1  ;;  %v876_v3 = vld [vmem:[%s1193_s2 + $0xd0] sm:$0xff]  ;;  %v883_v4 = vld [vmem:[%s1193_s2 + $0xc0] sm:$0xff]  ;;  %v894_v6 = vld [vmem:[%s1193_s2 + $0xe8] sm:$0xff] }
  0x15   : > { %v900_v7 = vld [vmem:[%s1193_s2 + $0xb0] sm:$0xff]  ;;  %325 = vmatpush.msra.mxu1 %v889_v5  ;;  %751 = vset.pattern.permute.xlu0 %v803_v8  ;;  %v908_v9 = vld [vmem:[%s1193_s2 + $0xd8] sm:$0xff]  ;;  %v914_v10 = vld [vmem:[%s1193_s2 + $0xa0] sm:$0xff] }
  0x16   : > { %306 = vmatpush.msra.mxu0 %v869_v2  ;;  %383 = vmatpush.msra.mxu2 %v869_v2  ;;  %v922_v11 = vld [vmem:[%s1193_s2 + $0xc8] sm:$0xff]  ;;  %v928_v12 = vld [vmem:[%s1193_s2 + $0x90] sm:$0xff]  ;;  %v936_v13 = vld [vmem:[%s1193_s2 + $0xb8] sm:$0xff] }
  0x17   : > { %402 = vmatpush.msra.mxu3 %v889_v5  ;;  %326 = vmatpush.msra.mxu1 %v894_v6  ;;  %v304_v14 = vld [vmem:[%s858_s27] sm:$0xff]  ;;  %v950_v16 = vld [vmem:[%s1193_s2 + $0xa8] sm:$0xff]  ;;  %v956_v17 = vld [vmem:[%s1193_s2 + $0x70] sm:$0xff] }
  0x18   : > { %307 = vmatpush.msra.mxu0 %v876_v3  ;;  %384 = vmatpush.msra.mxu2 %v876_v3  ;;  %v943_v15 = vld [vmem:[%s1193_s2 + $0x80] sm:$0xff]  ;;  %v964_v18 = vld [vmem:[%s1193_s2 + $0x98] sm:$0xff]  ;;  %v978_v20 = vld [vmem:[%s1193_s2 + $0x88] sm:$0xff] }
  0x19   : > { %403 = vmatpush.msra.mxu3 %v894_v6  ;;  %327 = vmatpush.msra.mxu1 %v908_v9  ;;  %v970_v19 = vld [vmem:[%s1193_s2 + $0x60] sm:$0xff]  ;;  %v710_v21 = vld [vmem:[%s858_s27 + $0x8] sm:$0xff]  ;;  %v985_v22 = vld [vmem:[%s1193_s2 + $0x50] sm:$0xff] }
  0x1a   : > { %308 = vmatpush.msra.mxu0 %v883_v4  ;;  %385 = vmatpush.msra.mxu2 %v883_v4  ;;  %v993_v23 = vld [vmem:[%s1193_s2 + $0x78] sm:$0xff]  ;;  %v999_v24 = vld [vmem:[%s1193_s2 + $0x40] sm:$0xff]  ;;  %v1006_v25 = vld [vmem:[%s1193_s2 + $0x68] sm:$0xff] }
  0x1b   : > { %404 = vmatpush.msra.mxu3 %v908_v9  ;;  %328 = vmatpush.msra.mxu1 %v922_v11  ;;  %v1012_v26 = vld [vmem:[%s1193_s2 + $0x30] sm:$0xff]  ;;  %v1020_v27 = vld [vmem:[%s1193_s2 + $0x58] sm:$0xff]  ;;  %v1026_v28 = vld [vmem:[%s1193_s2 + $0x20] sm:$0xff] }
  0x1c   : > { %309 = vmatpush.msra.mxu0 %v900_v7  ;;  %386 = vmatpush.msra.mxu2 %v900_v7  ;;  %v1034_v29 = vld [vmem:[%s1193_s2 + $0x48] sm:$0xff]  ;;  %v1040_v30 = vld [vmem:[%s1193_s2 + $0x10] sm:$0xff]  ;;  %v1048_v31 = vld [vmem:[%s1193_s2 + $0x38] sm:$0xff] }
  0x1d   : > { %372 = vperm.xlu0 %751, %v304_v14   ;;  %405 = vmatpush.msra.mxu3 %v922_v11  ;;  %v1054_v32 = vld [vmem:[%s1193_s2] sm:$0xff]  ;;  %v1064_v34 = vld [vmem:[%s1193_s2 + $0x28] sm:$0xff]  ;;  %v1073_v35 = vld [vmem:[%s1193_s2 + $0x18] sm:$0xff] }
  0x1e   : > { %310 = vmatpush.msra.mxu0 %v914_v10  ;;  %329 = vmatpush.msra.mxu1 %v936_v13  ;;  %v1059_v33 = vld [vmem:[#allocation2] sm:$0xff]  ;;  %v1081_v36 = vld [vmem:[%s1193_s2 + $0x8] sm:$0xff]  ;;  %v708_v0 = vld [vmem:[%s853_s24 + $0x10] sm:$0xff] }
  0x1f   : > { %387 = vmatpush.msra.mxu2 %v914_v10  ;;  %406 = vmatpush.msra.mxu3 %v936_v13  ;;  %v302_v37 = vld [vmem:[%s853_s24] sm:$0xff]  ;;  %v303_v55 = vld [vmem:[%s853_s24 + $0x8] sm:$0xff] }
  0x20   : > { %311 = vmatpush.msra.mxu0 %v928_v12  ;;  %330 = vmatpush.msra.mxu1 %v950_v16  ;;  %v1161_v45 = vld [vmem:[%s1194_s3] ss:$0 sm:$0xff] }
  0x21   : > { %388 = vmatpush.msra.mxu2 %v928_v12  ;;  %407 = vmatpush.msra.mxu3 %v950_v16 }
  0x22   : > { %312 = vmatpush.msra.mxu0 %v943_v15  ;;  %331 = vmatpush.msra.mxu1 %v964_v18 }
  0x23   : > { %389 = vmatpush.msra.mxu2 %v943_v15  ;;  %408 = vmatpush.msra.mxu3 %v964_v18 }
  0x24   : > { %313 = vmatpush.msra.mxu0 %v956_v17  ;;  %332 = vmatpush.msra.mxu1 %v978_v20 }
  0x25   : > { %449 = vperm.xlu0 %751, %v710_v21   ;;  %409 = vmatpush.msra.mxu3 %v978_v20 }
  0x26   : > { %314 = vmatpush.msra.mxu0 %v970_v19  ;;  %333 = vmatpush.msra.mxu1 %v993_v23 }
  0x27   : > { %390 = vmatpush.msra.mxu2 %v956_v17  ;;  %410 = vmatpush.msra.mxu3 %v993_v23 }
  0x28   : > { %315 = vmatpush.msra.mxu0 %v985_v22  ;;  %334 = vmatpush.msra.mxu1 %v1006_v25 }
  0x29   : > { %391 = vmatpush.msra.mxu2 %v970_v19  ;;  %411 = vmatpush.msra.mxu3 %v1006_v25 }
  0x2a   : > { %316 = vmatpush.msra.mxu0 %v999_v24  ;;  %335 = vmatpush.msra.mxu1 %v1020_v27 }
  0x2b   : > { %392 = vmatpush.msra.mxu2 %v985_v22  ;;  %412 = vmatpush.msra.mxu3 %v1020_v27 }
  0x2c   : > { %317 = vmatpush.msra.mxu0 %v1012_v26  ;;  %336 = vmatpush.msra.mxu1 %v1034_v29 }
  0x2d   : > { %393 = vmatpush.msra.mxu2 %v999_v24  ;;  %413 = vmatpush.msra.mxu3 %v1034_v29 }
  0x2e   : > { %318 = vmatpush.msra.mxu0 %v1026_v28  ;;  %337 = vmatpush.msra.mxu1 %v1048_v31 }
  0x2f   : > { %394 = vmatpush.msra.mxu2 %v1012_v26  ;;  %414 = vmatpush.msra.mxu3 %v1048_v31 }
  0x30   : > { %319 = vmatpush.msra.mxu0 %v1040_v30  ;;  %338 = vmatpush.msra.mxu1 %v1064_v34 }
  0x31   : > { %395 = vmatpush.msra.mxu2 %v1026_v28  ;;  %415 = vmatpush.msra.mxu3 %v1064_v34 }
  0x32   : > { %320 = vmatpush.msra.mxu0 %v1054_v32  ;;  %339 = vmatpush.msra.mxu1 %v1073_v35 }
  0x33   : > { %321 = vmatmul.f32.vlgmr.msra.gmra.mxu0 %v1059_v33  ;;  %396 = vmatpush.msra.mxu2 %v1040_v30 }
  0x34   : > { %459 = vmatpush.msrb.mxu0 %v864_v1  ;;  %416 = vmatpush.msra.mxu3 %v1073_v35 }
  0x35   : > { %340 = vmatpush.msra.mxu1 %v1081_v36  ;;  %397 = vmatpush.msra.mxu2 %v1054_v32 }
  0x36   : > { %460 = vmatpush.msrb.mxu0 %v869_v2  ;;  %341 = vmatmul.f32.vlgmr.msra.gmra.mxu1 %v1059_v33 }
  0x37   : > { %417 = vmatpush.msra.mxu3 %v1081_v36  ;;  %479 = vmatpush.msrb.mxu1 %v889_v5 }
  0x38   : > { %461 = vmatpush.msrb.mxu0 %v876_v3  ;;  %752 = vset.pattern.permute.xlu1 %v803_v8 }
  0x39   : > { %480 = vmatpush.msrb.mxu1 %v894_v6  ;;  %536 = vmatpush.msrb.mxu2 %v864_v1 }
  0x3a   : > { %462 = vmatpush.msrb.mxu0 %v883_v4  ;;  %556 = vmatpush.msrb.mxu3 %v889_v5 }
  0x3b   : > { %481 = vmatpush.msrb.mxu1 %v908_v9  ;;  %537 = vmatpush.msrb.mxu2 %v869_v2 }
  0x3c   : > { %463 = vmatpush.msrb.mxu0 %v900_v7  ;;  %557 = vmatpush.msrb.mxu3 %v894_v6  ;;  %v714_v6 = vld [vmem:[%s858_s27 + $0x10] sm:$0xff] }
  0x3d   : > { %482 = vmatpush.msrb.mxu1 %v922_v11  ;;  %538 = vmatpush.msrb.mxu2 %v876_v3 }
  0x3e   : > { %464 = vmatpush.msrb.mxu0 %v914_v10  ;;  %558 = vmatpush.msrb.mxu3 %v908_v9  ;;  %v718_v9 = vld [vmem:[%s858_s27 + $0x18] sm:$0xff] }
  0x3f   : > { %483 = vmatpush.msrb.mxu1 %v936_v13  ;;  %539 = vmatpush.msrb.mxu2 %v883_v4 }
  0x40   : > { %465 = vmatpush.msrb.mxu0 %v928_v12  ;;  %559 = vmatpush.msrb.mxu3 %v922_v11 }
  0x41   : > { %484 = vmatpush.msrb.mxu1 %v950_v16  ;;  %540 = vmatpush.msrb.mxu2 %v900_v7 }
  0x42   : > { %466 = vmatpush.msrb.mxu0 %v943_v15  ;;  %560 = vmatpush.msrb.mxu3 %v936_v13 }
  0x43   : > { %485 = vmatpush.msrb.mxu1 %v964_v18  ;;  %541 = vmatpush.msrb.mxu2 %v914_v10 }
  0x44   : > { %467 = vmatpush.msrb.mxu0 %v956_v17  ;;  %561 = vmatpush.msrb.mxu3 %v950_v16 }
  0x45   : > { %486 = vmatpush.msrb.mxu1 %v978_v20  ;;  %542 = vmatpush.msrb.mxu2 %v928_v12 }
  0x46   : > { %468 = vmatpush.msrb.mxu0 %v970_v19  ;;  %562 = vmatpush.msrb.mxu3 %v964_v18 }
  0x47   : > { %487 = vmatpush.msrb.mxu1 %v993_v23  ;;  %543 = vmatpush.msrb.mxu2 %v943_v15 }
  0x48   : > { %469 = vmatpush.msrb.mxu0 %v985_v22  ;;  %563 = vmatpush.msrb.mxu3 %v978_v20 }
  0x49   : > { %488 = vmatpush.msrb.mxu1 %v1006_v25  ;;  %544 = vmatpush.msrb.mxu2 %v956_v17 }
  0x4a   : > { %470 = vmatpush.msrb.mxu0 %v999_v24  ;;  %564 = vmatpush.msrb.mxu3 %v993_v23 }
  0x4b   : > { %489 = vmatpush.msrb.mxu1 %v1020_v27  ;;  %545 = vmatpush.msrb.mxu2 %v970_v19  ;;  %v709_v19 = vld [vmem:[%s853_s24 + $0x18] sm:$0xff] }
  0x4c   : > { %471 = vmatpush.msrb.mxu0 %v1012_v26  ;;  %565 = vmatpush.msrb.mxu3 %v1006_v25 }
  0x4d   : > { %490 = vmatpush.msrb.mxu1 %v1034_v29  ;;  %546 = vmatpush.msrb.mxu2 %v985_v22 }
  0x4e   : > { %472 = vmatpush.msrb.mxu0 %v1026_v28  ;;  %566 = vmatpush.msrb.mxu3 %v1020_v27 }
  0x4f   : > { %491 = vmatpush.msrb.mxu1 %v1048_v31  ;;  %547 = vmatpush.msrb.mxu2 %v999_v24 }
  0x50   : > { %473 = vmatpush.msrb.mxu0 %v1040_v30  ;;  %567 = vmatpush.msrb.mxu3 %v1034_v29 }
  0x51   : > { %492 = vmatpush.msrb.mxu1 %v1064_v34  ;;  %548 = vmatpush.msrb.mxu2 %v1012_v26 }
  0x52   : > { %474 = vmatpush.msrb.mxu0 %v1054_v32  ;;  %568 = vmatpush.msrb.mxu3 %v1048_v31 }
  0x53   : > { %493 = vmatpush.msrb.mxu1 %v1073_v35  ;;  %549 = vmatpush.msrb.mxu2 %v1026_v28  ;;  %v712_v28 = vld [vmem:[%s853_s24 + $0x20] sm:$0xff] }
  0x54   : > { %569 = vmatpush.msrb.mxu3 %v1064_v34  ;;  %526 = vperm.xlu1 %752, %v714_v6  }
  0x55   : > { %494 = vmatpush.msrb.mxu1 %v1081_v36  ;;  %550 = vmatpush.msrb.mxu2 %v1040_v30 }
  0x56   : > { %570 = vmatpush.msrb.mxu3 %v1073_v35 }
  0x57   : > { %551 = vmatpush.msrb.mxu2 %v1054_v32 }
  0x58   : > { %571 = vmatpush.msrb.mxu3 %v1081_v36 }
  0x5c   : > { %603 = vperm.xlu1 %752, %v718_v9  }
  0x8f   : > { %v373_v61 = vpop.permute.xlu0 %372 }
  0x97   : > { %v450_v25 = vpop.permute.xlu0 %449 }
  0xb0   : > { %v322_v38 = vpop.f32.mrf.mxu0 }
  0xb1   : > { %v345_v39 = vadd.f32 %v322_v38, %v302_v37 }
  0xb3   : > { %v707_v40 = vmul.f32 -1.442695, %v345_v39  ;;  %v342_v47 = vpop.f32.mrf.mxu1 }
  0xb4   : > { %v365_v52 = vadd.f32 %v1161_v45, %v342_v47 }
  0xb5   : > { %754 = vpow2.f32 %v707_v40 }
  0xbb   : > { %v755_v41 = vpop.eup %754 }
  0xbc   : > { %v349_v42 = vadd.f32 1.0, %v755_v41 }
  0xbe   : > { %756 = vrcp.f32 %v349_v42  ;;  %v361_v48 = vand.u32 2147483648, %v349_v42  ;;  %v359_v50 = vand.u32 2147483647, %v349_v42  ;;  %vm355_vm1 = vweird.f32 %v349_v42 }
  0xc0   : > { %v362_v53 = vor.u32 1.1754944e-38, %v361_v48  ;;  %vm360_vm3 = vcmp.eq.f32.partialorder %v359_v50, 8.507059e+37 }
  0xc4   : > { %v757_v43 = vpop.eup %756 }
  0xc5   : > { %v351_v44 = vmul.f32 %v757_v43, %v349_v42  ;;  %vm356_vm0 = vweird.f32 %v757_v43 }
  0xc6   : > { %vm357_vm2 = vmor %vm355_vm1, %vm356_vm0 }
  0xc7   : > { %v352_v46 = vsub.f32 1.0, %v351_v44 }
  0xc9   : > { %v353_v49 = vmul.f32 %v757_v43, %v352_v46  ;;  %v713_v46 = vld [vmem:[%s853_s24 + $0x28] sm:$0xff] }
  0xcb   : > { %v354_v51 = vadd.f32 %v757_v43, %v353_v49 }
  0xcd   : > { %v358_v54 = vsel %vm357_vm2, %v757_v43, %v354_v51 }
  0xce   : > { %v363_v56 = vsel %vm360_vm3, %v362_v53, %v358_v54 }
  0xcf   : > { %v366_v57 = vmul.f32 %v365_v52, %v363_v56  ;;  %v527_v52 = vpop.permute.xlu1 %526 }
  0xd1   : > { %v367_v58 = vadd.f32 %v366_v57, %v303_v55  ;;  %v716_v55 = vld [vmem:[%s853_s24 + $0x30] sm:$0xff] }
  0xd3   : > { %758 = vtanh.f32 %v367_v58 }
  0xd9   : > { %v759_v59 = vpop.eup %758 }
  0xda   : > { %v369_v60 = vsub.f32 %v759_v59, %v1059_v33 }
  0xdc   : > { %v375_v62 = vmul.f32 %v373_v61, %v369_v60 }
  0xde   : > { %v376_v63 = vadd.f32 %v375_v62, %v1059_v33 }
  0xe0   : > { %398 = vmatmul.f32.vlgmr.msra.gmra.mxu2 %v376_v63  ;;  %418 = vmatmul.f32.vlgmr.msra.gmra.mxu3 %v376_v63 }
 0x163   : > { %v399_v1 = vpop.f32.mrf.mxu2  ;;  %v419_v14 = vpop.f32.mrf.mxu3 }
 0x164   : > { %v422_v2 = vadd.f32 %v708_v0, %v399_v1  ;;  %v442_v18 = vadd.f32 %v1161_v45, %v419_v14  ;;  %v604_v14 = vpop.permute.xlu1 %603 }
 0x166   : > { %v711_v3 = vmul.f32 -1.442695, %v422_v2 }
 0x168   : > { %760 = vpow2.f32 %v711_v3 }
 0x16e   : > { %v761_v4 = vpop.eup %760 }
 0x16f   : > { %v426_v5 = vadd.f32 1.0, %v761_v4 }
 0x171   : > { %762 = vrcp.f32 %v426_v5  ;;  %v438_v11 = vand.u32 2147483648, %v426_v5  ;;  %v436_v13 = vand.u32 2147483647, %v426_v5  ;;  %vm432_vm5 = vweird.f32 %v426_v5 }
 0x173   : > { %v439_v16 = vor.u32 1.1754944e-38, %v438_v11  ;;  %vm437_vm7 = vcmp.eq.f32.partialorder %v436_v13, 8.507059e+37 }
 0x177   : > { %v763_v7 = vpop.eup %762 }
 0x178   : > { %v428_v8 = vmul.f32 %v763_v7, %v426_v5  ;;  %vm433_vm4 = vweird.f32 %v763_v7 }
 0x179   : > { %vm434_vm6 = vmor %vm432_vm5, %vm433_vm4 }
 0x17a   : > { %v429_v10 = vsub.f32 1.0, %v428_v8  ;;  %v717_v8 = vld [vmem:[%s853_s24 + $0x38] sm:$0xff] }
 0x17c   : > { %v430_v12 = vmul.f32 %v763_v7, %v429_v10 }
 0x17e   : > { %v431_v15 = vadd.f32 %v763_v7, %v430_v12 }
 0x180   : > { %v435_v17 = vsel %vm434_vm6, %v763_v7, %v431_v15 }
 0x181   : > { %v440_v20 = vsel %vm437_vm7, %v439_v16, %v435_v17 }
 0x182   : > { %v443_v21 = vmul.f32 %v442_v18, %v440_v20 }
 0x184   : > { %v444_v22 = vadd.f32 %v709_v19, %v443_v21 }
 0x186   : > { %764 = vtanh.f32 %v444_v22 }
 0x18c   : > { %v765_v23 = vpop.eup %764 }
 0x18d   : > { %v446_v24 = vsub.f32 %v765_v23, %v376_v63 }
 0x18f   : > { %v452_v26 = vmul.f32 %v450_v25, %v446_v24 }
 0x191   : > { %v453_v27 = vadd.f32 %v452_v26, %v376_v63 }
 0x193   : > { %475 = vmatmul.f32.vlgmr.msrb.gmra.mxu0 %v453_v27  ;;  %495 = vmatmul.f32.vlgmr.msrb.gmra.mxu1 %v453_v27 }
 0x210   : > { %v476_v29 = vpop.f32.mrf.mxu0  ;;  %v496_v40 = vpop.f32.mrf.mxu1 }
 0x211   : > { %v499_v30 = vadd.f32 %v712_v28, %v476_v29  ;;  %v519_v44 = vadd.f32 %v1161_v45, %v496_v40 }
 0x213   : > { %v715_v31 = vmul.f32 -1.442695, %v499_v30 }
 0x215   : > { %766 = vpow2.f32 %v715_v31 }
 0x21b   : > { %v767_v32 = vpop.eup %766 }
 0x21c   : > { %v503_v33 = vadd.f32 1.0, %v767_v32 }
 0x21e   : > { %768 = vrcp.f32 %v503_v33  ;;  %v515_v37 = vand.u32 2147483648, %v503_v33  ;;  %v513_v39 = vand.u32 2147483647, %v503_v33  ;;  %vm509_vm9 = vweird.f32 %v503_v33 }
 0x220   : > { %v516_v42 = vor.u32 1.1754944e-38, %v515_v37  ;;  %vm514_vm11 = vcmp.eq.f32.partialorder %v513_v39, 8.507059e+37 }
 0x224   : > { %v769_v34 = vpop.eup %768 }
 0x225   : > { %v505_v35 = vmul.f32 %v769_v34, %v503_v33  ;;  %vm510_vm8 = vweird.f32 %v769_v34 }
 0x226   : > { %vm511_vm10 = vmor %vm509_vm9, %vm510_vm8 }
 0x227   : > { %v506_v36 = vsub.f32 1.0, %v505_v35 }
 0x229   : > { %v507_v38 = vmul.f32 %v769_v34, %v506_v36 }
 0x22b   : > { %v508_v41 = vadd.f32 %v769_v34, %v507_v38 }
 0x22d   : > { %v512_v43 = vsel %vm511_vm10, %v769_v34, %v508_v41 }
 0x22e   : > { %v517_v47 = vsel %vm514_vm11, %v516_v42, %v512_v43 }
 0x22f   : > { %v520_v48 = vmul.f32 %v519_v44, %v517_v47 }
 0x231   : > { %v521_v49 = vadd.f32 %v713_v46, %v520_v48 }
 0x233   : > { %770 = vtanh.f32 %v521_v49 }
 0x239   : > { %v771_v50 = vpop.eup %770 }
 0x23a   : > { %v523_v51 = vsub.f32 %v771_v50, %v453_v27 }
 0x23c   : > { %v529_v53 = vmul.f32 %v527_v52, %v523_v51 }
 0x23e   : > { %v530_v54 = vadd.f32 %v529_v53, %v453_v27 }
 0x240   : > { %552 = vmatmul.f32.vlgmr.msrb.gmra.mxu2 %v530_v54  ;;  %572 = vmatmul.f32.vlgmr.msrb.gmra.mxu3 %v530_v54 }
 0x2c3   : > { %v553_v56 = vpop.f32.mrf.mxu2  ;;  %v573_v3 = vpop.f32.mrf.mxu3 }
 0x2c4   : > { %v576_v57 = vadd.f32 %v716_v55, %v553_v56  ;;  %v596_v7 = vadd.f32 %v1161_v45, %v573_v3 }
 0x2c6   : > { %v719_v58 = vmul.f32 -1.442695, %v576_v57 }
 0x2c8   : > { %772 = vpow2.f32 %v719_v58 }
 0x2ce   : > { %v773_v59 = vpop.eup %772 }
 0x2cf   : > { %v580_v60 = vadd.f32 1.0, %v773_v59 }
 0x2d1   : > { %774 = vrcp.f32 %v580_v60  ;;  %v592_v0 = vand.u32 2147483648, %v580_v60  ;;  %v590_v2 = vand.u32 2147483647, %v580_v60  ;;  %vm586_vm13 = vweird.f32 %v580_v60 }
 0x2d3   : > { %v593_v5 = vor.u32 1.1754944e-38, %v592_v0  ;;  %vm591_vm15 = vcmp.eq.f32.partialorder %v590_v2, 8.507059e+37 }
 0x2d7   : > { %v775_v61 = vpop.eup %774 }
 0x2d8   : > { %v582_v62 = vmul.f32 %v775_v61, %v580_v60  ;;  %vm587_vm12 = vweird.f32 %v775_v61 }
 0x2d9   : > { %vm588_vm14 = vmor %vm586_vm13, %vm587_vm12 }
 0x2da   : > { %v583_v63 = vsub.f32 1.0, %v582_v62 }
 0x2dc   : > { %v584_v1 = vmul.f32 %v775_v61, %v583_v63 }
 0x2de   : > { %v585_v4 = vadd.f32 %v775_v61, %v584_v1 }
 0x2e0   : > { %v589_v6 = vsel %vm588_vm14, %v775_v61, %v585_v4 }
 0x2e1   : > { %v594_v9 = vsel %vm591_vm15, %v593_v5, %v589_v6 }
 0x2e2   : > { %v597_v10 = vmul.f32 %v596_v7, %v594_v9 }
 0x2e4   : > { %v598_v11 = vadd.f32 %v717_v8, %v597_v10 }
 0x2e6   : > { %776 = vtanh.f32 %v598_v11 }
 0x2ec   : > { %v777_v12 = vpop.eup %776 }
 0x2ed   : > { %v600_v13 = vsub.f32 %v777_v12, %v530_v54 }
 0x2ef   : > { %v606_v15 = vmul.f32 %v604_v14, %v600_v13  ;;  %612 = sbr.rel (%p720_p6) target bundleno = 757 (0x2f5), region = 44 }
 0x2f1   : > { %v607_v16 = vadd.f32 %v606_v15, %v530_v54 }
 0x2f3   : > { %608 = vst [vmem:[#allocation2] sm:$0xff] %v607_v16 }
 0x2f4   : > { %613 = vst [vmem:[%s1195_s4] sm:$0xff] %v607_v16 }
 0x2f5 PF: > { %s14_s17 = sadd.s32 1, %s800_s17   ;;  %s1196_s15 = smov %s796_s16 }
 0x2f6   : > { %p11_p7 = scmp.ge.s32.totalorder %s14_s17, 4   ;;  %s1197_s16 = smov %s1199_s18 }
 0x2f8   :  { %13 = sbr.rel (!%p11_p7) target bundleno = 2 (0x2), region = 83 }

</bundles_post_ra>
